<compile_context>
chip_gen: v6e
topology: v6e:2x2x1
jax: 0.10.0
libtpu: 0.0.40
codegen_flags: <defaults>
</compile_context>

<pallas_src>
import math

import jax
import jax.numpy as jnp
from jax.experimental import pallas as pl
from jax.experimental.pallas import tpu as pltpu

_LANE = 128
_GRANULE = 16          # sublane granule safe for both f32 (8) and bf16 (16) blocks


def _round_up(n, m):
    return (n + m - 1) // m * m


def _mlp_kernel(x_ref, w1_ref, b1_ref, w2_ref, b2_ref, w3_ref, b3_ref, o_ref):
    # One (batch_tile, in_dim) activation tile against VMEM-resident padded weights.
    cdt = w1_ref.dtype
    x = x_ref[...].astype(cdt)                                  # in-kernel cast (no HBM pass)

    h1 = jnp.dot(x, w1_ref[...], preferred_element_type=jnp.float32) + b1_ref[...]
    h1 = jnp.maximum(h1, 0.0).astype(cdt)                       # layer1: Linear + ReLU

    h2 = jnp.dot(h1, w2_ref[...], preferred_element_type=jnp.float32) + b2_ref[...]
    h2 = jnp.maximum(h2, 0.0).astype(cdt)                       # layer2: Linear + ReLU

    h3 = jnp.dot(h2, w3_ref[...], preferred_element_type=jnp.float32) + b3_ref[...]
    o_ref[...] = h3.astype(o_ref.dtype)                         # layer3: Linear (no act)


def prepare_params(params, compute_dtype=jnp.bfloat16, lane=_LANE):
    """One-time conversion of PyTorch-convention params (w: (out,in), b: (out,)):
    transpose to (in,out), zero-pad the *output* feature dims to lane multiples,
    cast weights to the MXU compute dtype, keep biases f32 as (1, out_p) rows.
    w1's input dim is NOT padded -- x is consumed unpadded by the kernel."""
    def pad2(a, rows, cols):
        return jnp.pad(a, ((0, rows - a.shape[0]), (0, cols - a.shape[1])))

    h1, in_dim = params["w1"].shape
    h2 = params["w2"].shape[0]
    out_dim = params["w3"].shape[0]
    h1_p = _round_up(h1, lane)
    h2_p = _round_up(h2, lane)
    out_p = _round_up(out_dim, lane)

    return {
        "w1": pad2(params["w1"].T.astype(compute_dtype), in_dim, h1_p),
        "w2": pad2(params["w2"].T.astype(compute_dtype), h1_p, h2_p),
        "w3": pad2(params["w3"].T.astype(compute_dtype), h2_p, out_p),
        "b1": pad2(params["b1"].astype(jnp.float32).reshape(1, -1), 1, h1_p),
        "b2": pad2(params["b2"].astype(jnp.float32).reshape(1, -1), 1, h2_p),
        "b3": pad2(params["b3"].astype(jnp.float32).reshape(1, -1), 1, out_p),
        "in_dim": in_dim,
        "out_dim": out_dim,
        "compute_dtype": compute_dtype,
    }


def _vmem_budget_bytes():
    """~85% of this generation's physical VMEM (v5e/v6e: 128 MiB, v7x: 64 MiB)."""
    try:
        cap = pltpu.get_tpu_info().vmem_capacity_bytes
    except Exception:
        cap = 64 * 1024 * 1024          # conservative fallback (v7x per-core size)
    return int(cap * 0.85)              # leave headroom for Mosaic internals


def activation_net_forward(x, prep, batch_tile=None, out_dtype=jnp.bfloat16):
    """x: (batch, in_dim) f32/bf16.  prep: output of prepare_params.
    Returns (batch, out_dim) in out_dtype (bf16 by default -> halved writeback)."""
    w1, w2, w3 = prep["w1"], prep["w2"], prep["w3"]
    b1, b2, b3 = prep["b1"], prep["b2"], prep["b3"]
    in_dim, out_dim = prep["in_dim"], prep["out_dim"]

    batch = x.shape[0]
    assert x.shape[1] == in_dim, "input feature dim mismatch"
    h1_p, h2_p, out_p = w1.shape[1], w2.shape[1], w3.shape[1]

    # ---- explicit VMEM budget (drives batch_tile and the compiler limit) ----
    vmem_limit = _vmem_budget_bytes()
    reserve = 2 * 1024 * 1024                       # Mosaic internal scratch / misc
    w_isz = jnp.dtype(prep["compute_dtype"]).itemsize
    x_isz = jnp.dtype(x.dtype).itemsize
    o_isz = jnp.dtype(out_dtype).itemsize
    # Weights/biases are single-buffered (Buffered(1)): one resident copy each.
    weight_bytes = ((w1.size + w2.size + w3.size) * w_isz
                    + (b1.size + b2.size + b3.size) * 4)
    # Per batch row: double-buffered x/out tiles + f32 h1/h2/h3 intermediates
    # (these exceed the vreg file at realistic tiles, so they live in VMEM scratch)
    # + the compute-dtype casts feeding each matmul.
    bytes_per_row = (2 * in_dim * x_isz
                     + 2 * out_p * o_isz
                     + 4 * (h1_p + h2_p + out_p)
                     + w_isz * (in_dim + h1_p + h2_p))
    avail = vmem_limit - reserve - weight_bytes
    if avail < _GRANULE * bytes_per_row:
        # TODO(synk): add a K/N-tiled weight-streaming path (grid over hidden dims
        # with an f32 VMEM accumulator + pl.when init/finalize) for weight sets that
        # exceed the per-core VMEM budget (mainly relevant on v7x's 64 MiB VMEM).
        raise ValueError(
            f"Resident weights ({weight_bytes / 2**20:.1f} MiB) do not fit the VMEM "
            f"budget ({vmem_limit / 2**20:.1f} MiB); weight-streaming fallback not "
            f"implemented.")

    if batch_tile is None:
        cap = min(2048, avail // bytes_per_row)
        cap = max(_GRANULE, (cap // _GRANULE) * _GRANULE)
        # Split the batch evenly over the minimal number of tiles <= cap so the
        # trailing partial block (wasted MXU work / masked stores) stays small.
        n_tiles = pl.cdiv(batch, cap)
        batch_tile = _round_up(pl.cdiv(batch, n_tiles), _GRANULE)
    else:
        # Guard user-supplied tiles: must satisfy sublane granularity.
        batch_tile = _round_up(max(int(batch_tile), _GRANULE), _GRANULE)

    grid = (pl.cdiv(batch, batch_tile),)

    # Resident (never-changing) operands: constant index_map + single buffer.
    def resident(shape):
        return pl.BlockSpec(shape, lambda i: (0, 0), pipeline_mode=pl.Buffered(1))

    out_padded = pl.pallas_call(
        _mlp_kernel,
        out_shape=jax.ShapeDtypeStruct((batch, out_p), out_dtype),
        grid_spec=pl.GridSpec(
            grid=grid,
            in_specs=[
                pl.BlockSpec((batch_tile, in_dim), lambda i: (i, 0)),   # stream x
                resident(w1.shape), resident(b1.shape),
                resident(w2.shape), resident(b2.shape),
                resident(w3.shape), resident(b3.shape),
            ],
            out_specs=pl.BlockSpec((batch_tile, out_p), lambda i: (i, 0)),
        ),
        compiler_params=pltpu.CompilerParams(
            dimension_semantics=("parallel",),      # megacore split on v7x
            vmem_limit_bytes=vmem_limit,            # generation-aware, 15% headroom
        ),
    )(x, w1, b1, w2, b2, w3, b3)

    return out_padded[:, :out_dim]


def init_params(key, in_dim, n_hidden_1, n_hidden_2, out_dim, dtype=jnp.float32):
    """Deterministic init mimicking nn.Linear's U(-1/sqrt(fan_in), 1/sqrt(fan_in))."""
    ks = jax.random.split(key, 6)

    def linear(kw, kb, fan_in, fan_out):
        bound = 1.0 / math.sqrt(fan_in)
        w = jax.random.uniform(kw, (fan_out, fan_in), dtype, -bound, bound)
        b = jax.random.uniform(kb, (fan_out,), dtype, -bound, bound)
        return w, b

    w1, b1 = linear(ks[0], ks[1], in_dim, n_hidden_1)
    w2, b2 = linear(ks[2], ks[3], n_hidden_1, n_hidden_2)
    w3, b3 = linear(ks[4], ks[5], n_hidden_2, out_dim)
    return {"w1": w1, "b1": b1, "w2": w2, "b2": b2, "w3": w3, "b3": b3}


if __name__ == "__main__":
    key = jax.random.PRNGKey(0)
    k_x, k_p = jax.random.split(key)

    # Small shapes consistent with the module's forward (flat features -> MLP).
    batch, in_dim, n_hidden_1, n_hidden_2, out_dim = 8, 32, 64, 64, 16

    x = jax.random.normal(k_x, (batch, in_dim), jnp.float32)
    params = init_params(k_p, in_dim, n_hidden_1, n_hidden_2, out_dim)

    prep = prepare_params(params)                  # transpose / pad / bf16 cast (once)
    out = activation_net_forward(x, prep)          # bf16 output by default
    out = jax.block_until_ready(out)
    assert out.shape == (batch, out_dim)
    out_f32 = out.astype(jnp.float32)

    # Reference 1: same bf16-operand / f32-accumulation math in plain JAX (tight,
    # up to the final bf16 output rounding).
    cdt = jnp.bfloat16
    h = jnp.dot(x.astype(cdt), params["w1"].T.astype(cdt),
                preferred_element_type=jnp.float32) + params["b1"]
    h = jnp.maximum(h, 0.0).astype(cdt)
    h = jnp.dot(h, params["w2"].T.astype(cdt),
                preferred_element_type=jnp.float32) + params["b2"]
    h = jnp.maximum(h, 0.0).astype(cdt)
    ref_bf16 = jnp.dot(h, params["w3"].T.astype(cdt),
                       preferred_element_type=jnp.float32) + params["b3"]
    assert jnp.allclose(out_f32, ref_bf16, atol=2e-2, rtol=2e-2), "mismatch vs bf16 ref"

    # Reference 2: full-f32 PyTorch-equivalent forward (loose tol: bf16 MXU inputs + bf16 out).
    h = jnp.maximum(x @ params["w1"].T + params["b1"], 0.0)
    h = jnp.maximum(h @ params["w2"].T + params["b2"], 0.0)
    ref_f32 = h @ params["w3"].T + params["b3"]
    assert jnp.allclose(out_f32, ref_f32, atol=5e-2, rtol=5e-2), "mismatch vs f32 ref"

    print("KERNEL_OK")
</pallas_src>

<mosaic_0001>
module attributes {stable_mosaic.version = 11 : i64} {
  func.func @_mlp_kernel(%arg0: i32, %arg1: memref<16x32xf32, #tpu.memory_space<vmem>>, %arg2: memref<32x128xbf16, #tpu.memory_space<vmem>>, %arg3: memref<1x128xf32, #tpu.memory_space<vmem>>, %arg4: memref<128x128xbf16, #tpu.memory_space<vmem>>, %arg5: memref<1x128xf32, #tpu.memory_space<vmem>>, %arg6: memref<128x128xbf16, #tpu.memory_space<vmem>>, %arg7: memref<1x128xf32, #tpu.memory_space<vmem>>, %arg8: memref<16x128xbf16, #tpu.memory_space<vmem>>) attributes {dimension_semantics = [#tpu.dimension_semantics<parallel>], iteration_bounds = array<i64: 1>, scalar_prefetch = 0 : i64, scratch_operands = 0 : i64, tpu.core_type = #tpu.core_type<tc>, window_params = [{transform_indices = @transform_0, window_bounds = array<i64: 16, 32>}, {pipeline_mode = #tpu.pipeline_mode<synchronous>, transform_indices = @transform_1, window_bounds = array<i64: 32, 128>}, {pipeline_mode = #tpu.pipeline_mode<synchronous>, transform_indices = @transform_2, window_bounds = array<i64: 1, 128>}, {pipeline_mode = #tpu.pipeline_mode<synchronous>, transform_indices = @transform_3, window_bounds = array<i64: 128, 128>}, {pipeline_mode = #tpu.pipeline_mode<synchronous>, transform_indices = @transform_4, window_bounds = array<i64: 1, 128>}, {pipeline_mode = #tpu.pipeline_mode<synchronous>, transform_indices = @transform_5, window_bounds = array<i64: 128, 128>}, {pipeline_mode = #tpu.pipeline_mode<synchronous>, transform_indices = @transform_6, window_bounds = array<i64: 1, 128>}, {transform_indices = @transform_7, window_bounds = array<i64: 16, 128>}]} {
    %c0 = arith.constant 0 : index
    %c0_0 = arith.constant 0 : index
    %0 = vector.load %arg1[%c0, %c0_0] : memref<16x32xf32, #tpu.memory_space<vmem>>, vector<16x32xf32>
    %1 = arith.truncf %0 : vector<16x32xf32> to vector<16x32xbf16>
    %c0_1 = arith.constant 0 : index
    %c0_2 = arith.constant 0 : index
    %2 = vector.load %arg2[%c0_1, %c0_2] : memref<32x128xbf16, #tpu.memory_space<vmem>>, vector<32x128xbf16>
    %cst = arith.constant dense<0.000000e+00> : vector<16x128xf32>
    %3 = tpu.matmul %1, %2, %cst {dimension_numbers = #tpu.dot_dimension_numbers<[1], [0], [0], [1], [0, 0, 1, 1], [], []>} : vector<16x32xbf16>, vector<32x128xbf16>, vector<16x128xf32> -> vector<16x128xf32>
    %c0_3 = arith.constant 0 : index
    %c0_4 = arith.constant 0 : index
    %4 = vector.load %arg3[%c0_3, %c0_4] : memref<1x128xf32, #tpu.memory_space<vmem>>, vector<1x128xf32>
    %5 = vector.broadcast %4 : vector<1x128xf32> to vector<16x128xf32>
    %6 = arith.addf %3, %5 : vector<16x128xf32>
    %cst_5 = arith.constant 0.000000e+00 : f32
    %7 = vector.broadcast %cst_5 : f32 to vector<16x128xf32>
    %8 = arith.maximumf %6, %7 : vector<16x128xf32>
    %9 = arith.truncf %8 : vector<16x128xf32> to vector<16x128xbf16>
    %c0_6 = arith.constant 0 : index
    %c0_7 = arith.constant 0 : index
    %10 = vector.load %arg4[%c0_6, %c0_7] : memref<128x128xbf16, #tpu.memory_space<vmem>>, vector<128x128xbf16>
    %cst_8 = arith.constant dense<0.000000e+00> : vector<16x128xf32>
    %11 = tpu.matmul %9, %10, %cst_8 {dimension_numbers = #tpu.dot_dimension_numbers<[1], [0], [0], [1], [0, 0, 1, 1], [], []>} : vector<16x128xbf16>, vector<128x128xbf16>, vector<16x128xf32> -> vector<16x128xf32>
    %c0_9 = arith.constant 0 : index
    %c0_10 = arith.constant 0 : index
    %12 = vector.load %arg5[%c0_9, %c0_10] : memref<1x128xf32, #tpu.memory_space<vmem>>, vector<1x128xf32>
    %13 = vector.broadcast %12 : vector<1x128xf32> to vector<16x128xf32>
    %14 = arith.addf %11, %13 : vector<16x128xf32>
    %cst_11 = arith.constant 0.000000e+00 : f32
    %15 = vector.broadcast %cst_11 : f32 to vector<16x128xf32>
    %16 = arith.maximumf %14, %15 : vector<16x128xf32>
    %17 = arith.truncf %16 : vector<16x128xf32> to vector<16x128xbf16>
    %c0_12 = arith.constant 0 : index
    %c0_13 = arith.constant 0 : index
    %18 = vector.load %arg6[%c0_12, %c0_13] : memref<128x128xbf16, #tpu.memory_space<vmem>>, vector<128x128xbf16>
    %cst_14 = arith.constant dense<0.000000e+00> : vector<16x128xf32>
    %19 = tpu.matmul %17, %18, %cst_14 {dimension_numbers = #tpu.dot_dimension_numbers<[1], [0], [0], [1], [0, 0, 1, 1], [], []>} : vector<16x128xbf16>, vector<128x128xbf16>, vector<16x128xf32> -> vector<16x128xf32>
    %c0_15 = arith.constant 0 : index
    %c0_16 = arith.constant 0 : index
    %20 = vector.load %arg7[%c0_15, %c0_16] : memref<1x128xf32, #tpu.memory_space<vmem>>, vector<1x128xf32>
    %21 = vector.broadcast %20 : vector<1x128xf32> to vector<16x128xf32>
    %22 = arith.addf %19, %21 : vector<16x128xf32>
    %23 = arith.truncf %22 : vector<16x128xf32> to vector<16x128xbf16>
    %c0_17 = arith.constant 0 : index
    %c0_18 = arith.constant 0 : index
    %24 = vector.load %arg8[%c0_17, %c0_18] : memref<16x128xbf16, #tpu.memory_space<vmem>>, vector<16x128xbf16>
    tpu.vector_store %arg8[%c0_17, %c0_18], %23 {strides = array<i32>} : memref<16x128xbf16, #tpu.memory_space<vmem>>, vector<16x128xbf16>,
    return
  }
  func.func @transform_0(%arg0: i32) -> (i32, i32) {
    %c0_i32 = arith.constant 0 : i32
    %c0_i32_0 = arith.constant 0 : i32
    return %arg0, %c0_i32 : i32, i32
  }
  func.func @transform_1(%arg0: i32) -> (i32, i32) {
    %c0_i32 = arith.constant 0 : i32
    %c0_i32_0 = arith.constant 0 : i32
    %c0_i32_1 = arith.constant 0 : i32
    return %c0_i32, %c0_i32_0 : i32, i32
  }
  func.func @transform_2(%arg0: i32) -> (i32, i32) {
    %c0_i32 = arith.constant 0 : i32
    %c0_i32_0 = arith.constant 0 : i32
    %c0_i32_1 = arith.constant 0 : i32
    return %c0_i32, %c0_i32_0 : i32, i32
  }
  func.func @transform_3(%arg0: i32) -> (i32, i32) {
    %c0_i32 = arith.constant 0 : i32
    %c0_i32_0 = arith.constant 0 : i32
    %c0_i32_1 = arith.constant 0 : i32
    return %c0_i32, %c0_i32_0 : i32, i32
  }
  func.func @transform_4(%arg0: i32) -> (i32, i32) {
    %c0_i32 = arith.constant 0 : i32
    %c0_i32_0 = arith.constant 0 : i32
    %c0_i32_1 = arith.constant 0 : i32
    return %c0_i32, %c0_i32_0 : i32, i32
  }
  func.func @transform_5(%arg0: i32) -> (i32, i32) {
    %c0_i32 = arith.constant 0 : i32
    %c0_i32_0 = arith.constant 0 : i32
    %c0_i32_1 = arith.constant 0 : i32
    return %c0_i32, %c0_i32_0 : i32, i32
  }
  func.func @transform_6(%arg0: i32) -> (i32, i32) {
    %c0_i32 = arith.constant 0 : i32
    %c0_i32_0 = arith.constant 0 : i32
    %c0_i32_1 = arith.constant 0 : i32
    return %c0_i32, %c0_i32_0 : i32, i32
  }
  func.func @transform_7(%arg0: i32) -> (i32, i32) {
    %c0_i32 = arith.constant 0 : i32
    %c0_i32_0 = arith.constant 0 : i32
    return %arg0, %c0_i32 : i32, i32
  }
}

</mosaic_0001>

<bundles_post_ra>
// kernel: tpu_custom_call.1
= control target key start
LH: loop header
LB: loop body
LE: loop exit
PB: predicated region body
PF: predicated region fallthrough
CT: control target
= control target key end

     0   :  { %12 = vsyncpa [#allocation3], 0  ;;  %s761_s0 = inlined_call_operand.hbm [shape: f32[8,32], index: 0, kind: input, shape index: {}]   ;;  %s762_s1 = inlined_call_operand.hbm [shape: bf16[32,128], index: 1, kind: input, shape index: {}]   ;;  %s763_s2 = inlined_call_operand.vmem [shape: f32[1,128], index: 2, kind: input, shape index: {}]   ;;  %s764_s3 = inlined_call_operand.hbm [shape: bf16[128,128], index: 3, kind: input, shape index: {}]   ;;  %s765_s4 = inlined_call_operand.vmem [shape: f32[1,128], index: 4, kind: input, shape index: {}]   ;;  %s766_s5 = inlined_call_operand.hbm [shape: bf16[128,128], index: 5, kind: input, shape index: {}]   ;;  %s767_s6 = inlined_call_operand.vmem [shape: f32[1,128], index: 6, kind: input, shape index: {}]   ;;  %s768_s7 = inlined_call_operand.hbm [shape: bf16[8,128], index: 7, kind: output, shape index: {}]  }
   0x1   :  { %13 = vsyncpa [#allocation6], 0 }
   0x2   :  { %14 = vsyncpa [#allocation9], 0 }
   0x3   :  { %15 = vsyncpa [#allocation4], 0 }
   0x4   :  { %20 = vsyncadd [#allocation3], 128  ;;  %s650_s24 = smov [#allocation5]  }
   0x5   :  { %s33_s25 = sshll.u32 %s650_s24, 4  ;;  %s34_s25 = int_to_ptr.vmem [resolvable:$true] %s33_s25 }
   0x6   :  { %s550_s26 = scalar_lea.vmem %s34_s25, 256  ;;  %p555_p1 = scmp.lt.s32.totalorder %s34_s25, %s34_s25 }
   0x7   :  { %p551_p0 = scmp.ne.s32.totalorder %s34_s25, %s550_s26  ;;  %p556_p2 = scmp.lt.s32.totalorder %s550_s26, %s550_s26 }
   0x9   :  { %p557_p3 = por %p556_p2, %p555_p1 }
   0xb   :  { %p558_p4 = pnand %p557_p3, %p551_p0 }
   0xd   :  { %561 = shalt.err (!%p558_p4)
}
   0xe   :  { %s651_s27 = smov 64   ;;  %s652_s28 = smov 4  }
   0xf   :  { %39 = dma.hbm_to_vmem [thread:$0]  %s762_s1, 256, %s34_s25, [#allocation6], %s651_s27, %s651_s27, %s652_s28  }
  0x10   :  { %s653_s8 = smov [#allocation2]  }
  0x11   :  { %s21_s9 = sshll.u32 %s653_s8, 4  ;;  %s22_s9 = int_to_ptr.vmem [resolvable:$true] %s21_s9 }
  0x12   :  { %s570_s10 = scalar_lea.vmem %s22_s9, 128  ;;  %s574_s11 = scalar_lea.vmem %s22_s9, 256 }
  0x13   :  { %p571_p5 = scmp.ne.s32.totalorder %s22_s9, %s570_s10  ;;  %p575_p6 = scmp.lt.s32.totalorder %s22_s9, %s22_s9 }
  0x14   :  { %p576_p7 = scmp.lt.s32.totalorder %s574_s11, %s570_s10 }
  0x16   :  { %p577_p8 = por %p576_p7, %p575_p6 }
  0x18   :  { %p578_p9 = pnand %p577_p8, %p571_p5 }
  0x1a   :  { %581 = shalt.err (!%p578_p9)
}
  0x1b   :  { %s654_s12 = smov 128   ;;  %s655_s13 = smov 8  }
  0x1c   :  { %27 = dma.hbm_to_vmem [thread:$0]  %s761_s0, 128, %s22_s9, [#allocation3], %s654_s12, %s654_s12, %s655_s13  }
  0x1d   :  { %s656_s16 = smov [#allocation7]   ;;  %s657_s1 = smov [#allocation8]  }
  0x1e   :  { %s47_s17 = sshll.u32 %s656_s16, 4  ;;  %s61_s18 = sshll.u32 %s657_s1, 4  ;;  %s48_s17 = int_to_ptr.vmem [resolvable:$true] %s47_s17  ;;  %s62_s18 = int_to_ptr.vmem [resolvable:$true] %s61_s18 }
  0x1f   :  { %s590_s19 = scalar_lea.vmem %s48_s17, 1024  ;;  %p595_p11 = scmp.lt.s32.totalorder %s48_s17, %s48_s17 }
  0x20   :  { %p591_p10 = scmp.ne.s32.totalorder %s48_s17, %s590_s19  ;;  %p596_p12 = scmp.lt.s32.totalorder %s590_s19, %s590_s19 }
  0x22   :  { %p597_p13 = por %p596_p12, %p595_p11 }
  0x24   :  { %p598_p0 = pnand %p597_p13, %p591_p10 }
  0x26   :  { %601 = shalt.err (!%p598_p0)
}
  0x27   :  { %53 = dma.hbm_to_vmem [thread:$0]  %s764_s3, 1024, %s48_s17, [#allocation6], %s651_s27, %s651_s27, %s652_s28  }
  0x28   :  { %s610_s0 = scalar_lea.vmem %s62_s18, 1024  ;;  %p615_p2 = scmp.lt.s32.totalorder %s62_s18, %s62_s18 }
  0x29   :  { %p611_p1 = scmp.ne.s32.totalorder %s62_s18, %s610_s0  ;;  %p616_p3 = scmp.lt.s32.totalorder %s610_s0, %s610_s0 }
  0x2b   :  { %p617_p4 = por %p616_p3, %p615_p2 }
  0x2d   :  { %p618_p5 = pnand %p617_p4, %p611_p1 }
  0x2f   :  { %621 = shalt.err (!%p618_p5)
}
  0x30   :  { %67 = dma.hbm_to_vmem [thread:$0]  %s766_s5, 1024, %s62_s18, [#allocation9], %s651_s27, %s651_s27, %s652_s28  }
  0x31   :  { %642 = dma.done.wait [#allocation3], 256  }
  0x32   :  { %643 = vsyncadd [#allocation3], 4294967040 }
  0x33   :  { %644 = dma.done.wait [#allocation6], 1280  }
  0x34   :  { %645 = vsyncadd [#allocation6], 4294966016 }
  0x35   :  { %646 = dma.done.wait [#allocation9], 1024  }
  0x36   :  { %647 = vsyncadd [#allocation9], 4294966272  ;;  %v658_v0 = vmov 0.0   ;;  %vm659_vm0 = vmmov 0   ;;  %v524_v1 = vld [vmem:[#allocation5 + $0x8] sm:$0xff]   ;;  %v525_v2 = vld [vmem:[#allocation5] sm:$0xff]  }
  0x37   :  { %465 = vmatprep.subr.bf16.mxu0 %v658_v0  ;;  %469 = vmatprep.mubr.msk.bf16.mxu0 %vm659_vm0, %v658_v0  ;;  %v83_v3 = vld [vmem:[#allocation2] sm:$0xff]  ;;  %v84_v4 = vld [vmem:[#allocation2 + $0x8] sm:$0xff]  ;;  %v526_v5 = vld [vmem:[#allocation7 + $0x38] sm:$0xff]   ;;  %vm109_vm1 = vcmask 261120  }
  0x38   :  { %473 = vmatprep.subr.bf16.mxu1 %v658_v0  ;;  %489 = vmatprep.mubr.msk.bf16.mxu1 %vm659_vm0, %v658_v0  ;;  %v85_v6 = vpack.c.bf16 %v84_v4, %v83_v3  ;;  %v527_v7 = vld [vmem:[#allocation7 + $0x30] sm:$0xff]   ;;  %v528_v8 = vld [vmem:[#allocation7 + $0x28] sm:$0xff]   ;;  %v529_v9 = vld [vmem:[#allocation7 + $0x20] sm:$0xff]  }
  0x39   :  { %466 = vmatpush3.bf16.msra.mxu0 %v524_v1  ;;  %474 = vmatpush3.bf16.msra.mxu1 %v526_v5  ;;  %v530_v10 = vld [vmem:[#allocation7 + $0x18] sm:$0xff]   ;;  %v531_v11 = vld [vmem:[#allocation7 + $0x10] sm:$0xff]   ;;  %v532_v12 = vld [vmem:[#allocation7 + $0x8] sm:$0xff]  }
  0x3a   :  { %467 = vmatprep.subr.bf16.mxu0 %v658_v0  ;;  %475 = vmatprep.subr.bf16.mxu1 %v658_v0  ;;  %v533_v13 = vld [vmem:[#allocation7] sm:$0xff]   ;;  %v534_v14 = vld [vmem:[#allocation8 + $0x38] sm:$0xff]   ;;  %v535_v15 = vld [vmem:[#allocation8 + $0x30] sm:$0xff]  }
  0x3b   :  { %v536_v16 = vld [vmem:[#allocation8 + $0x28] sm:$0xff]   ;;  %v537_v17 = vld [vmem:[#allocation8 + $0x20] sm:$0xff]   ;;  %v538_v18 = vld [vmem:[#allocation8 + $0x18] sm:$0xff]  }
  0x3c   :  { %v413_v19 = vld [vmem:[%s763_s2] ss:$0 sm:$0xff]  ;;  %v539_v29 = vld [vmem:[#allocation8 + $0x10] sm:$0xff]   ;;  %v540_v30 = vld [vmem:[#allocation8 + $0x8] sm:$0xff]  }
  0x3d   :  { %468 = vmatpush3.bf16.msra.mxu0 %v525_v2  ;;  %476 = vmatpush3.bf16.msra.mxu1 %v527_v7  ;;  %v541_v31 = vld [vmem:[#allocation8] sm:$0xff]  }
  0x3e   :  { %493 = vmatprep.subr.bf16.mxu0 %v658_v0  ;;  %477 = vmatprep.subr.bf16.mxu1 %v658_v0  ;;  %v417_v32 = vld [vmem:[%s765_s4] ss:$0 sm:$0xff] }
  0x3f   :  { %v426_v43 = vld [vmem:[%s767_s6] ss:$0 sm:$0xff] }
  0x40   :  { %470 = vmatmul.mubr.msk.bf16.vlgmr.msra.gmra.mxu0 %vm109_vm1, %v85_v6 }
  0x41   :  { %509 = vmatprep.mubr.msk.bf16.mxu0 %vm659_vm0, %v658_v0  ;;  %478 = vmatpush3.bf16.msra.mxu1 %v528_v8 }
  0x42   :  { %479 = vmatprep.subr.bf16.mxu1 %v658_v0  ;;  %494 = vmatpush3.bf16.msra.mxu0 %v534_v14 }
  0x43   :  { %495 = vmatprep.subr.bf16.mxu0 %v658_v0 }
  0x45   :  { %480 = vmatpush3.bf16.msra.mxu1 %v529_v9 }
  0x46   :  { %481 = vmatprep.subr.bf16.mxu1 %v658_v0  ;;  %496 = vmatpush3.bf16.msra.mxu0 %v535_v15 }
  0x47   :  { %497 = vmatprep.subr.bf16.mxu0 %v658_v0 }
  0x49   :  { %482 = vmatpush3.bf16.msra.mxu1 %v530_v10 }
  0x4a   :  { %483 = vmatprep.subr.bf16.mxu1 %v658_v0  ;;  %498 = vmatpush3.bf16.msra.mxu0 %v536_v16 }
  0x4b   :  { %499 = vmatprep.subr.bf16.mxu0 %v658_v0 }
  0x4d   :  { %484 = vmatpush3.bf16.msra.mxu1 %v531_v11 }
  0x4e   :  { %485 = vmatprep.subr.bf16.mxu1 %v658_v0  ;;  %500 = vmatpush3.bf16.msra.mxu0 %v537_v17 }
  0x4f   :  { %501 = vmatprep.subr.bf16.mxu0 %v658_v0 }
  0x51   :  { %486 = vmatpush3.bf16.msra.mxu1 %v532_v12 }
  0x52   :  { %487 = vmatprep.subr.bf16.mxu1 %v658_v0  ;;  %502 = vmatpush3.bf16.msra.mxu0 %v538_v18 }
  0x53   :  { %503 = vmatprep.subr.bf16.mxu0 %v658_v0 }
  0x55   :  { %488 = vmatpush3.bf16.msra.mxu1 %v533_v13 }
  0x56   :  { %504 = vmatpush3.bf16.msra.mxu0 %v539_v29 }
  0x57   :  { %505 = vmatprep.subr.bf16.mxu0 %v658_v0 }
  0x5a   :  { %506 = vmatpush3.bf16.msra.mxu0 %v540_v30 }
  0x5b   :  { %507 = vmatprep.subr.bf16.mxu0 %v658_v0 }
  0x5e   :  { %508 = vmatpush3.bf16.msra.mxu0 %v541_v31 }
 0x100   :  { %v147_v20 = vpop.f32.mrf.mxu0 }
 0x101   :  { %v148_v22 = vadd.f32 %v413_v19, %v147_v20 }
 0x102   :  { %v471_v21 = vpop.f32.mrf.mxu0 }
 0x103   :  { %v154_v26 = vmax.f32 %v148_v22, 0.0 }
 0x104   :  { %v150_v23 = vpop.f32.mrf.mxu0 }
 0x105   :  { %v151_v24 = vadd.f32 %v413_v19, %v150_v23 }
 0x106   :  { %v472_v25 = vpop.f32.mrf.mxu0 }
 0x107   :  { %v155_v27 = vmax.f32 %v151_v24, 0.0 }
 0x109   :  { %v156_v28 = vpack.c.bf16 %v155_v27, %v154_v26 }
 0x10b   :  { %490 = vmatmul.mubr.bf16.vlgmr.msra.gmra.mxu1 %v156_v28 }
 0x1cb   :  { %v262_v33 = vpop.f32.mrf.mxu1 }
 0x1cc   :  { %v263_v35 = vadd.f32 %v417_v32, %v262_v33 }
 0x1cd   :  { %v491_v34 = vpop.f32.mrf.mxu1 }
 0x1ce   :  { %v269_v39 = vmax.f32 %v263_v35, 0.0 }
 0x1cf   :  { %v265_v36 = vpop.f32.mrf.mxu1 }
 0x1d0   :  { %v266_v37 = vadd.f32 %v417_v32, %v265_v36 }
 0x1d1   :  { %v492_v38 = vpop.f32.mrf.mxu1 }
 0x1d2   :  { %v270_v40 = vmax.f32 %v266_v37, 0.0 }
 0x1d4   :  { %v271_v41 = vpack.c.bf16 %v270_v40, %v269_v39 }
 0x1d6   :  { %510 = vmatmul.mubr.bf16.vlgmr.msra.gmra.mxu0 %v271_v41 }
 0x296   :  { %v377_v42 = vpop.f32.mrf.mxu0 }
 0x297   :  { %v378_v46 = vadd.f32 %v426_v43, %v377_v42 }
 0x298   :  { %v511_v44 = vpop.f32.mrf.mxu0 }
 0x29a   :  { %v380_v45 = vpop.f32.mrf.mxu0 }
 0x29b   :  { %v381_v47 = vadd.f32 %v426_v43, %v380_v45 }
 0x29c   :  { %v512_v48 = vpop.f32.mrf.mxu0 }
 0x29d   :  { %v442_v49 = vpack.c.bf16 %v381_v47, %v378_v46 }
 0x29f   :  { %443 = vst [vmem:[#allocation10] sm:$0xff] %v442_v49  }
 0x2a0   :  { %398 = vsyncadd [#allocation4], 64  ;;  %s660_s4 = smov [#allocation10]  }
 0x2a1   :  { %s399_s29 = sshll.u32 %s660_s4, 4  ;;  %s400_s29 = int_to_ptr.vmem [resolvable:$true] %s399_s29 }
 0x2a2   :  { %s622_s30 = scalar_lea.vmem %s400_s29, 64  ;;  %s626_s8 = scalar_lea.vmem %s400_s29, 128 }
 0x2a3   :  { %p623_p6 = scmp.ne.s32.totalorder %s400_s29, %s622_s30  ;;  %p627_p7 = scmp.lt.s32.totalorder %s400_s29, %s400_s29 }
 0x2a4   :  { %p628_p8 = scmp.lt.s32.totalorder %s626_s8, %s622_s30 }
 0x2a6   :  { %p629_p9 = por %p628_p8, %p627_p7 }
 0x2a8   :  { %p630_p10 = pnand %p629_p9, %p623_p6 }
 0x2aa   :  { %633 = shalt.err (!%p630_p10)
}
 0x2ab   :  { %405 = dma.vmem_to_hbm [thread:$0]  %s400_s29, 64, %s768_s7, [#allocation4], %s651_s27, %s651_s27, %s652_s28  }
 0x2ac   :  { %648 = dma.done.wait [#allocation4], 128  }
 0x2ad   :  { %649 = vsyncadd [#allocation4], 4294967168 }
 0x2ae   :  { %409 = vsyncpa [#allocation3], 1 }
 0x2af   :  { %410 = vsyncpa [#allocation6], 1 }
 0x2b0   :  { %411 = vsyncpa [#allocation9], 1 }
 0x2b1   :  { %412 = vsyncpa [#allocation4], 1 }

</bundles_post_ra>
